<compile_context>
chip_gen: v7x
topology: tpu7x:2x2x1
jax: 0.10.0
libtpu: 0.0.40
codegen_flags: <defaults>
</compile_context>

<pallas_src>
import functools

import jax
import jax.numpy as jnp
from jax.experimental import pallas as pl
from jax.experimental.pallas import tpu as pltpu


def _ann_kernel(drop_prob, seed, tile_rows, out_rows, out_cols,
                x_ref,                     # (TB, window, n_zone)
                w1_ref, b1_ref,            # (window, FC), (1, FC)
                w23_ref, b23_ref,          # (FC, FC),     (1, FC)
                o_ref):                    # (out_rows, out_cols)
    x = x_ref[...].astype(jnp.float32)

    # linear1 + relu.  Contract over `window` (axis 1 of x) -> the transpose of
    # the original module is absorbed into the contraction, no data relayout
    # round-trip through HBM.
    h1 = jax.lax.dot_general(x, w1_ref[...], (((1,), (0,)), ((), ())),
                             preferred_element_type=jnp.float32)
    h1 = jnp.maximum(h1 + b1_ref[...], 0.0)            # (TB, n_zone, FC)

    # fused linear2 . linear3 (scale 1/(1-p) already folded into W23/b23 when
    # dropout is active).
    h3 = jax.lax.dot_general(h1, w23_ref[...], (((2,), (0,)), ((), ())),
                             preferred_element_type=jnp.float32)
    h3 = h3 + b23_ref[...]                              # (TB, n_zone, FC)

    fc = h3.shape[-1]
    h3 = h3.reshape(tile_rows, fc)

    if drop_prob > 0.0:
        # Stateless per-element hash -> Bernoulli keep mask, decorrelated across
        # grid tiles via the global row index.
        row = jax.lax.broadcasted_iota(jnp.uint32, (tile_rows, fc), 0)
        col = jax.lax.broadcasted_iota(jnp.uint32, (tile_rows, fc), 1)
        base = (pl.program_id(0) * tile_rows).astype(jnp.uint32)
        idx = (row + base) * jnp.uint32(fc) + col
        h = idx * jnp.uint32(0x9E3779B9) + jnp.uint32(seed)
        h = h ^ (h >> 16)
        h = h * jnp.uint32(0x85EBCA6B)
        h = h ^ (h >> 13)
        h = h * jnp.uint32(0xC2B2AE35)
        h = h ^ (h >> 16)
        thresh = jnp.uint32(min(int(drop_prob * 4294967296.0), 4294967295))
        h3 = jnp.where(h >= thresh, h3, 0.0)

    # Lane-dense store: (tile_rows, FC) and (out_rows, out_cols) are the same
    # row-major bytes.
    o_ref[...] = h3.reshape(out_rows, out_cols).astype(o_ref.dtype)


def ann_forward(x, params, *, window, n_zone, fc_unit, drop_prob=0.1,
                training=True, seed=0, tile_rows_target=1024):
    """x: anything reshapeable to (-1, window, n_zone) -> ((B, n_zone, fc_unit),)"""
    w1, b1, w2, b2, w3, b3 = params

    x = x.reshape(-1, window, n_zone).astype(jnp.float32)   # view(-1, window, n_zone)
    B = x.shape[0]

    # Algebraic fusion of linear2 . linear3 (exact up to fp rounding).
    w23 = w2 @ w3                       # (FC, FC)
    b23 = b2 @ w3 + b3                  # (FC,)

    apply_dropout = bool(training) and float(drop_prob) > 0.0
    if apply_dropout:
        s = 1.0 / (1.0 - float(drop_prob))
        w23 = w23 * s
        b23 = b23 * s

    # Tile over batch; rows per tile = TB * n_zone.
    tb = max(1, min(B, tile_rows_target // max(1, n_zone)))
    n_tiles = -(-B // tb)               # cdiv
    b_pad = n_tiles * tb
    if b_pad != B:
        pad = jnp.zeros((b_pad - B, window, n_zone), x.dtype)
        x = jnp.concatenate([x, pad], axis=0)

    tile_rows = tb * n_zone
    # Lane-dense output layout when FC < 128 lanes and a tile packs evenly.
    lane_dense = (fc_unit < 128) and ((tile_rows * fc_unit) % 128 == 0)
    if lane_dense:
        out_cols = 128
        out_rows = (tile_rows * fc_unit) // 128
    else:
        out_cols = fc_unit
        out_rows = tile_rows

    kernel = functools.partial(
        _ann_kernel,
        float(drop_prob) if apply_dropout else 0.0,
        int(seed) & 0xFFFFFFFF,
        tile_rows, out_rows, out_cols)

    out = pl.pallas_call(
        kernel,
        grid=(n_tiles,),
        out_shape=jax.ShapeDtypeStruct((n_tiles * out_rows, out_cols), jnp.float32),
        in_specs=[
            pl.BlockSpec((tb, window, n_zone), lambda i: (i, 0, 0)),   # x tile
            pl.BlockSpec((window, fc_unit),    lambda i: (0, 0)),      # W1 (resident)
            pl.BlockSpec((1, fc_unit),         lambda i: (0, 0)),      # b1
            pl.BlockSpec((fc_unit, fc_unit),   lambda i: (0, 0)),      # W23
            pl.BlockSpec((1, fc_unit),         lambda i: (0, 0)),      # b23
        ],
        out_specs=pl.BlockSpec((out_rows, out_cols), lambda i: (i, 0)),
        compiler_params=pltpu.CompilerParams(
            dimension_semantics=("parallel",)),
    )(x, w1, b1.reshape(1, -1), w23, b23.reshape(1, -1))

    y = out.reshape(b_pad * n_zone, fc_unit)[: B * n_zone]
    return (y.reshape(B, n_zone, fc_unit),)


def ann_reference(x, params, *, window, n_zone):
    """Pure-JAX reference of the module forward WITHOUT dropout (for checking)."""
    w1, b1, w2, b2, w3, b3 = params
    xt = jnp.transpose(x.reshape(-1, window, n_zone), (0, 2, 1))
    h1 = jax.nn.relu(xt @ w1 + b1)
    h2 = h1 @ w2 + b2
    return h2 @ w3 + b3


def init_params(key, window, fc_unit):
    """PyTorch-style nn.Linear init: U(-1/sqrt(fan_in), 1/sqrt(fan_in)).
    Weights stored pre-transposed as (in_features, out_features)."""
    def linear(k, fan_in, fan_out):
        kw, kb = jax.random.split(k)
        bound = 1.0 / jnp.sqrt(fan_in)
        w = jax.random.uniform(kw, (fan_in, fan_out), jnp.float32, -bound, bound)
        b = jax.random.uniform(kb, (fan_out,), jnp.float32, -bound, bound)
        return w, b

    k1, k2, k3 = jax.random.split(key, 3)
    w1, b1 = linear(k1, window, fc_unit)
    w2, b2 = linear(k2, fc_unit, fc_unit * 2)
    w3, b3 = linear(k3, fc_unit * 2, fc_unit)
    return (w1, b1, w2, b2, w3, b3)


if __name__ == "__main__":
    # Small shapes consistent with the module's forward.
    B, window, n_zone, fc_unit = 2, 16, 4, 32
    drop_prob = 0.1

    key = jax.random.PRNGKey(0)
    k_params, k_x = jax.random.split(key)
    params = init_params(k_params, window, fc_unit)
    x = jax.random.normal(k_x, (B, window, n_zone), dtype=jnp.float32)

    # Numerical sanity check against a pure-JAX reference (dropout disabled so
    # it is deterministic); verifies the fused W2@W3 path and layout plumbing.
    (y_eval,) = ann_forward(x, params, window=window, n_zone=n_zone,
                            fc_unit=fc_unit, drop_prob=drop_prob, training=False)
    y_ref = ann_reference(x, params, window=window, n_zone=n_zone)
    assert y_eval.shape == (B, n_zone, fc_unit)
    assert jnp.allclose(y_eval, y_ref, atol=1e-4, rtol=1e-4), \
        float(jnp.max(jnp.abs(y_eval - y_ref)))

    # Training-mode forward (dropout active), matching the PyTorch module.
    (y,) = ann_forward(x, params, window=window, n_zone=n_zone,
                       fc_unit=fc_unit, drop_prob=drop_prob, training=True, seed=0)
    jax.block_until_ready(y)
    assert y.shape == (B, n_zone, fc_unit)
    print("KERNEL_OK")
</pallas_src>

<mosaic_0001>
module attributes {stable_mosaic.version = 11 : i64} {
  func.func @_ann_kernel(%arg0: i32, %arg1: memref<2x16x4xf32, #tpu.memory_space<vmem>>, %arg2: memref<16x32xf32, #tpu.memory_space<vmem>>, %arg3: memref<1x32xf32, #tpu.memory_space<vmem>>, %arg4: memref<32x32xf32, #tpu.memory_space<vmem>>, %arg5: memref<1x32xf32, #tpu.memory_space<vmem>>, %arg6: memref<2x128xf32, #tpu.memory_space<vmem>>) attributes {dimension_semantics = [#tpu.dimension_semantics<parallel>], iteration_bounds = array<i64: 1>, scalar_prefetch = 0 : i64, scratch_operands = 0 : i64, tpu.core_type = #tpu.core_type<tc>, window_params = [{transform_indices = @transform_0, window_bounds = array<i64: 2, 16, 4>}, {pipeline_mode = #tpu.pipeline_mode<synchronous>, transform_indices = @transform_1, window_bounds = array<i64: 16, 32>}, {pipeline_mode = #tpu.pipeline_mode<synchronous>, transform_indices = @transform_2, window_bounds = array<i64: 1, 32>}, {pipeline_mode = #tpu.pipeline_mode<synchronous>, transform_indices = @transform_3, window_bounds = array<i64: 32, 32>}, {pipeline_mode = #tpu.pipeline_mode<synchronous>, transform_indices = @transform_4, window_bounds = array<i64: 1, 32>}, {transform_indices = @transform_5, window_bounds = array<i64: 2, 128>}]} {
    %c0 = arith.constant 0 : index
    %c0_0 = arith.constant 0 : index
    %c0_1 = arith.constant 0 : index
    %0 = vector.load %arg1[%c0, %c0_0, %c0_1] : memref<2x16x4xf32, #tpu.memory_space<vmem>>, vector<2x16x4xf32>
    %c0_2 = arith.constant 0 : index
    %c0_3 = arith.constant 0 : index
    %1 = vector.load %arg2[%c0_2, %c0_3] : memref<16x32xf32, #tpu.memory_space<vmem>>, vector<16x32xf32>
    %cst = arith.constant dense<0.000000e+00> : vector<2x4x32xf32>
    %2 = tpu.matmul %0, %1, %cst {dimension_numbers = #tpu.dot_dimension_numbers<[1], [0], [0, 2], [1], [0, 0, 0, 2, 1, 1], [], []>} : vector<2x16x4xf32>, vector<16x32xf32>, vector<2x4x32xf32> -> vector<2x4x32xf32>
    %c0_4 = arith.constant 0 : index
    %c0_5 = arith.constant 0 : index
    %3 = vector.load %arg3[%c0_4, %c0_5] : memref<1x32xf32, #tpu.memory_space<vmem>>, vector<1x32xf32>
    %4 = vector.shape_cast %3 : vector<1x32xf32> to vector<1x1x32xf32>
    %5 = vector.broadcast %4 : vector<1x1x32xf32> to vector<2x4x32xf32>
    %6 = arith.addf %2, %5 : vector<2x4x32xf32>
    %cst_6 = arith.constant 0.000000e+00 : f32
    %7 = vector.broadcast %cst_6 : f32 to vector<2x4x32xf32>
    %8 = arith.maximumf %6, %7 : vector<2x4x32xf32>
    %c0_7 = arith.constant 0 : index
    %c0_8 = arith.constant 0 : index
    %9 = vector.load %arg4[%c0_7, %c0_8] : memref<32x32xf32, #tpu.memory_space<vmem>>, vector<32x32xf32>
    %cst_9 = arith.constant dense<0.000000e+00> : vector<2x4x32xf32>
    %10 = tpu.matmul %8, %9, %cst_9 {dimension_numbers = #tpu.dot_dimension_numbers<[2], [0], [0, 1], [1], [0, 0, 0, 1, 1, 1], [], []>} : vector<2x4x32xf32>, vector<32x32xf32>, vector<2x4x32xf32> -> vector<2x4x32xf32>
    %c0_10 = arith.constant 0 : index
    %c0_11 = arith.constant 0 : index
    %11 = vector.load %arg5[%c0_10, %c0_11] : memref<1x32xf32, #tpu.memory_space<vmem>>, vector<1x32xf32>
    %12 = vector.shape_cast %11 : vector<1x32xf32> to vector<1x1x32xf32>
    %13 = vector.broadcast %12 : vector<1x1x32xf32> to vector<2x4x32xf32>
    %14 = arith.addf %10, %13 : vector<2x4x32xf32>
    %15 = vector.shape_cast %14 : vector<2x4x32xf32> to vector<8x32xf32>
    %16 = vector.shape_cast %15 : vector<8x32xf32> to vector<2x128xf32>
    %c0_12 = arith.constant 0 : index
    %c0_13 = arith.constant 0 : index
    %17 = vector.load %arg6[%c0_12, %c0_13] : memref<2x128xf32, #tpu.memory_space<vmem>>, vector<2x128xf32>
    tpu.vector_store %arg6[%c0_12, %c0_13], %16 {strides = array<i32>} : memref<2x128xf32, #tpu.memory_space<vmem>>, vector<2x128xf32>,
    return
  }
  func.func @transform_0(%arg0: i32) -> (i32, i32, i32) {
    %c0_i32 = arith.constant 0 : i32
    %c0_i32_0 = arith.constant 0 : i32
    %c0_i32_1 = arith.constant 0 : i32
    return %arg0, %c0_i32, %c0_i32_0 : i32, i32, i32
  }
  func.func @transform_1(%arg0: i32) -> (i32, i32) {
    %c0_i32 = arith.constant 0 : i32
    %c0_i32_0 = arith.constant 0 : i32
    %c0_i32_1 = arith.constant 0 : i32
    return %c0_i32, %c0_i32_0 : i32, i32
  }
  func.func @transform_2(%arg0: i32) -> (i32, i32) {
    %c0_i32 = arith.constant 0 : i32
    %c0_i32_0 = arith.constant 0 : i32
    %c0_i32_1 = arith.constant 0 : i32
    return %c0_i32, %c0_i32_0 : i32, i32
  }
  func.func @transform_3(%arg0: i32) -> (i32, i32) {
    %c0_i32 = arith.constant 0 : i32
    %c0_i32_0 = arith.constant 0 : i32
    %c0_i32_1 = arith.constant 0 : i32
    return %c0_i32, %c0_i32_0 : i32, i32
  }
  func.func @transform_4(%arg0: i32) -> (i32, i32) {
    %c0_i32 = arith.constant 0 : i32
    %c0_i32_0 = arith.constant 0 : i32
    %c0_i32_1 = arith.constant 0 : i32
    return %c0_i32, %c0_i32_0 : i32, i32
  }
  func.func @transform_5(%arg0: i32) -> (i32, i32) {
    %c0_i32 = arith.constant 0 : i32
    %c0_i32_0 = arith.constant 0 : i32
    return %arg0, %c0_i32 : i32, i32
  }
}

</mosaic_0001>

<bundles_post_ra>
// kernel: tpu_custom_call.1
= control target key start
LH: loop header
LB: loop body
LE: loop exit
PB: predicated region body
PF: predicated region fallthrough
CT: control target
= control target key end

     0   :  { %v407_v6 = vmov 0.0|0.0   ;;  %s496_s0 = inlined_call_operand.vmem [shape: f32[2,16,4], index: 0, kind: input, shape index: {}]   ;;  %s497_s1 = inlined_call_operand.vmem [shape: f32[16,32], index: 1, kind: input, shape index: {}]   ;;  %s498_s2 = inlined_call_operand.vmem [shape: f32[1,32], index: 2, kind: input, shape index: {}]   ;;  %s499_s3 = inlined_call_operand.vmem [shape: f32[32,32], index: 3, kind: input, shape index: {}]   ;;  %s500_s4 = inlined_call_operand.vmem [shape: f32[1,32], index: 4, kind: input, shape index: {}]   ;;  %s501_s5 = inlined_call_operand.hbm [shape: f32[2,128], index: 5, kind: output, shape index: {}]  }
   0x1   :  { %v23_v0 = vld [vmem:[%s496_s0 + $0x10] sm:$0xff]  ;;  %v21_v1 = vld [vmem:[%s496_s0] sm:$0xff]  ;;  %v26_v3 = vld [vmem:[%s497_s1 + $0x8] sm:$0xff]  ;;  %365 = vmatprep.subr.bf16.mxu0 %v407_v6  ;;  %368 = vmatprep.subr.bf16.mxu1 %v407_v6 }
   0x2   :  { %65 = vxpose.xlu1.b32.start [1/2] (short) (narrow) %v23_v0, 8  ;;  %33 = vxpose.xlu0.b32.start [1/2] (short) (narrow) %v21_v1, 8  ;;  %v25_v2 = vld [vmem:[%s497_s1] sm:$0xff]  ;;  %v24_v4 = vld [vmem:[%s496_s0 + $0x18] sm:$0xff]  ;;  %v22_v5 = vld [vmem:[%s496_s0 + $0x8] sm:$0xff] }
   0x3   :  { %v366_v7 = vpack.c.bf16 %v26_v3, %v25_v2 }
   0x4   :  { %10 = vsyncpa [#allocation3], 0  ;;  %vm408_vm0 = vmmov 0   ;;  %v409_v8 = vmov 0.0   ;;  %vm102_vm1 = vcmask 130048   ;;  %v180_v12 = vld [vmem:[%s499_s3] sm:$0xff]  ;;  %v273_v29 = vlaneseq }
   0x5   :  { %351 = vmatprep.mubr.msk.f32.mxu0 %vm408_vm0, %v409_v8  ;;  %362 = vmatprep.mubr.msk.f32.mxu1 %vm408_vm0, %v409_v8  ;;  %v181_v13 = vld [vmem:[%s499_s3 + $0x8] sm:$0xff]  ;;  %v182_v15 = vld [vmem:[%s499_s3 + $0x10] sm:$0xff]  ;;  %v183_v16 = vld [vmem:[%s499_s3 + $0x18] sm:$0xff]  ;;  %vm195_vm2 = vcmask 261120   ;;  %v410_v27 = vmov 1983009808  }
   0x6   :  { %367 = vmatpush3.bf16.msra.mxu0 %v366_v7  ;;  %66 = vxpose.xlu1.b32.end [2/2] (short) (narrow) %v24_v4, 8  ;;  %v369_v14 = vpack.c.bf16 %v181_v13, %v180_v12  ;;  %v372_v17 = vpack.c.bf16 %v183_v16, %v182_v15  ;;  %v335_v18 = vld [vmem:[%s498_s2] ss:$0 sm:$0xff]  ;;  %v271_v28 = vunpack.c.l.s4 %v410_v27  ;;  %v274_v33 = vshrl.u32 %v273_v29, 7  ;;  %s412_s2 = smov 64   ;;  %s414_s14 = smov 96  }
   0x7   :  { %34 = vxpose.xlu0.b32.end [2/2] (short) (narrow) %v22_v5, 8  ;;  %v100_v19 = vcombine.low %v335_v18, %v335_v18  ;;  %v337_v30 = vld [vmem:[%s500_s4] ss:$0 sm:$0xff]  ;;  %v411_v34 = vmov 1934713408   ;;  %s413_s4 = smov 32  }
   0x8   :  { %370 = vmatpush3.bf16.msra.mxu1 %v369_v14  ;;  %v193_v31 = vcombine.low %v337_v30, %v337_v30  ;;  %v272_v32 = vunpack.c.0.s8 %v271_v28  ;;  %v288_v35 = vunpack.c.l.s4 %v411_v34  ;;  %vm316_vm3 = vcmask 523264   ;;  %s415_s15 = smov [#allocation2]  }
   0x9   :  { %371 = vmatprep.subr.bf16.mxu1 %v407_v6  ;;  %s327_s16 = sshll.u32 %s415_s15, 4  ;;  %vm318_vm4 = vcmask 785408   ;;  %s328_s16 = int_to_ptr.vmem [resolvable:$true] %s327_s16 }
   0xa   :  { %v275_v38 = vsub.s32 %v272_v32, %v274_v33  ;;  %v289_v40 = vunpack.c.0.s8 %v288_v35  ;;  %s383_s17 = scalar_lea.vmem %s328_s16, 32  ;;  %p388_p1 = scmp.lt.s32.totalorder %s328_s16, %s328_s16 }
   0xb   :  { %p384_p0 = scmp.ne.s32.totalorder %s328_s16, %s383_s17  ;;  %p389_p2 = scmp.lt.s32.totalorder %s383_s17, %s383_s17 }
   0xc   :  { %373 = vmatpush3.bf16.msra.mxu1 %v372_v17  ;;  %v292_v44 = vsub.s32 %v289_v40, %v274_v33 }
   0xd   :  { %p390_p3 = por %p389_p2, %p388_p1 }
   0xf   :  { %p391_p4 = pnand %p390_p3, %p384_p0 }
  0x82   :  { %v81_v9 = vpop.trf.xlu1 }
  0x83   :  { %v49_v10 = vpop.trf.xlu0 }
  0x84   :  { %v99_v11 = vcombine.low %v49_v10, %v81_v9 }
  0x86   :  { %352 = vmatmul.mubr.msk.f32.vlgmr.msra.gmra.mrb[0].mxu0 %vm102_vm1, %v99_v11 }
 0x159   :  { %v171_v20 = vpop.f32.mrb[0].mxu0 }
 0x15a   :  { %v172_v21 = vadd.f32 %v171_v20, %v100_v19  ;;  %v353_v22 = vpop.f32.mrb[1].mxu0 }
 0x15c   :  { %v176_v23 = vcombine.high %v172_v21, %v172_v21  ;;  %v178_v24 = vmax.f32 %v172_v21, 0.0 }
 0x15e   :  { %v179_v25 = vmax.f32 %v176_v23, 0.0 }
 0x160   :  { %v192_v26 = vcombine.low %v178_v24, %v179_v25 }
 0x162   :  { %363 = vmatmul.mubr.msk.f32.vlgmr.msra.gmra.mrb[0].mxu1 %vm195_vm2, %v192_v26 }
 0x235   :  { %v264_v36 = vpop.f32.mrb[0].mxu1 }
 0x236   :  { %v265_v37 = vadd.f32 %v264_v36, %v193_v31  ;;  %v364_v39 = vpop.f32.mrb[1].mxu1 }
 0x238   :  { %v269_v41 = vcombine.high %v265_v37, %v265_v37  ;;  %v276_v42 = vrot.slane %v265_v37, %v275_v38 }
 0x23a   :  { %v284_v43 = vrot.slane %v269_v41, %v275_v38 }
 0x23c   :  { %v285_v45 = vcombine.low %v276_v42, %v284_v43  ;;  %v286_v46 = vcombine.high %v276_v42, %v284_v43 }
 0x23e   :  { %v300_v47 = vrot.slane %v286_v46, %v292_v44  ;;  %v293_v48 = vrot.slane %v285_v45, %v292_v44 }
 0x240   :  { %308 = vrot.lane.b32.xlu1 %v300_v47, %s412_s2  ;;  %v301_v49 = vcombine.high %v293_v48, %v409_v8  ;;  %v302_v50 = vcombine.high %v300_v47, %v409_v8 }
 0x242   :  { %304 = vrot.lane.b32.xlu0 %v301_v49, %s413_s4 }
 0x244   :  { %312 = vrot.lane.b32.xlu1 %v302_v50, %s414_s14 }
 0x2b2   :  { %v309_v51 = vpop.permute.xlu1 %308 }
 0x2b4   :  { %v305_v52 = vpop.permute.xlu0 %304 }
 0x2b5   :  { %v315_v53 = vsel %vm195_vm2, %v293_v48, %v305_v52 }
 0x2b6   :  { %v313_v54 = vpop.permute.xlu1 %312  ;;  %v317_v55 = vsel %vm316_vm3, %v315_v53, %v309_v51 }
 0x2b7   :  { %v319_v56 = vsel %vm318_vm4, %v317_v55, %v313_v54 }
 0x2b8   :  { %320 = vst [vmem:[#allocation2] sm:$0x3] %v319_v56 }
 0x2b9   :  { %394 = shalt.err (!%p391_p4)
}
 0x2ba   :  { %s395_s20 = scalar_lea.hbm %s501_s5, 32 }
 0x2bb   :  { %p396_p5 = scmp.ne.s32.totalorder %s501_s5, %s395_s20  ;;  %p399_p6 = scmp.lt.u32.totalorder %s395_s20, %s501_s5 }
 0x2bd   :  { %p401_p7 = pnand %p399_p6, %p396_p5 }
 0x2bf   :  { %404 = shalt.err (!%p401_p7)
}
 0x2c0   :  { %330 = dma.vmem_to_hbm [thread:$0]  %s328_s16, 32, %s501_s5, [#allocation3]  }
 0x2c1   :  { %405 = dma.done.wait [#allocation3], 32  }
 0x2c2   :  { %406 = vsyncadd [#allocation3], 4294967264 }
 0x2c3   :  { %334 = vsyncpa [#allocation3], 1 }

</bundles_post_ra>
